<compile_context>
chip_gen: v5e
topology: v5e:2x2
jax: 0.10.0
libtpu: 0.0.40
codegen_flags: <defaults>
</compile_context>

<pallas_src>
import jax
import jax.numpy as jnp
from jax.experimental import pallas as pl
from jax.experimental.pallas import tpu as pltpu


def lfm_kernel(uid_ref, iid_ref, uemb_ref, iemb_ref, out_ref):
    """One batch tile: gather user/item rows, multiply, reduce over factors.

    uid_ref  : (1, TB)        int32   user indices for this tile (lane-dense)
    iid_ref  : (1, TB)        int32   item indices for this tile (lane-dense)
    uemb_ref : (n_users, F)   float32 full user embedding table (single-buffered)
    iemb_ref : (n_items, F)   float32 full item embedding table (single-buffered)
    out_ref  : (1, TB)        float32 per-example prediction (lane-dense)
    """
    uid = uid_ref[...]                      # (1, TB)
    iid = iid_ref[...]                      # (1, TB)
    tb = uid.shape[1]
    n_users = uemb_ref.shape[0]
    n_items = iemb_ref.shape[0]

    # Transposed one-hots: oh[r, b] = (r == idx[b]).  Built directly against the
    # lane-dense index row, so no sublane/lane shuffles are needed anywhere.
    oh_u = (jax.lax.broadcasted_iota(jnp.int32, (n_users, tb), 0) == uid)
    oh_i = (jax.lax.broadcasted_iota(jnp.int32, (n_items, tb), 0) == iid)
    oh_u = oh_u.astype(jnp.float32)         # (n_users, TB)
    oh_i = oh_i.astype(jnp.float32)         # (n_items, TB)

    # Gather on the MXU: contract over the table-row axis on both operands,
    # i.e. (table)^T @ one_hot^T  ->  (F, TB).  Exact in f32 (one-hot select).
    dn = (((0,), (0,)), ((), ()))
    ues_t = jax.lax.dot_general(uemb_ref[...], oh_u, dimension_numbers=dn,
                                preferred_element_type=jnp.float32)  # (F, TB)
    uis_t = jax.lax.dot_general(iemb_ref[...], oh_i, dimension_numbers=dn,
                                preferred_element_type=jnp.float32)  # (F, TB)

    # (ues * uis).sum over factors, reduced straight into the lane-dense
    # (1, TB) output row (cross-sublane reduce; no (TB, 1) intermediate).
    out_ref[...] = jnp.sum(ues_t * uis_t, axis=0, keepdims=True)


def _vmem_capacity_bytes():
    """Physical VMEM per TensorCore; conservative fallback (v7x = 64 MiB)."""
    try:
        return int(pltpu.get_tpu_info().vmem_capacity_bytes)
    except Exception:
        return 64 * 1024 * 1024


def _footprint_bytes(n_users, n_items, F, tile_b):
    table_bytes = (n_users + n_items) * F * 4                    # single-buffered
    onehot_bytes = (n_users + n_items) * tile_b * 4              # in-kernel one-hots
    gather_bytes = 2 * F * tile_b * 4                            # (F, TB) gathers
    io_bytes = 2 * (2 * tile_b * 4) + 2 * (tile_b * 4)           # ids + out (dbl-buf)
    return table_bytes + onehot_bytes + gather_bytes + io_bytes


def _pick_tile_b(B, n_users, n_items, F, vmem_cap, max_tile_b=512):
    """Largest lane-aligned tile that (a) fits the VMEM budget, (b) doesn't
    exceed what the batch needs, and (c) leaves >=2 tiles when B allows (so
    both v7x TensorCores get work; extra tiles beyond that buy nothing on
    single-TC v5e/v6e)."""
    if B <= 128:
        batch_cap = 128
    else:
        batch_cap = pl.cdiv(B, 2 * 128) * 128      # -> at least 2 grid tiles
    tile = max(128, min(max_tile_b, batch_cap) // 128 * 128)
    budget = vmem_cap // 2                         # headroom for scratch / vregs
    while tile > 128 and _footprint_bytes(n_users, n_items, F, tile) > budget:
        tile -= 128
    return tile


def lfm_forward(users, items, user_emb, item_emb, *, tile_b=None):
    """Pallas equivalent of LFM.forward(users, items) -> (B,) float32."""
    B = users.shape[0]
    n_users, F = user_emb.shape
    n_items, F2 = item_emb.shape
    assert F == F2

    vmem_cap = _vmem_capacity_bytes()
    if tile_b is None:
        tile_b = _pick_tile_b(B, n_users, n_items, F, vmem_cap)
    assert tile_b % 128 == 0, "batch tile must be lane-dense (multiple of 128)"

    # Pad the batch up to a multiple of tile_b (padded rows use index 0 and are
    # discarded after the call).  Flat (1, B_pad) layout: lane-dense ids/output
    # whose (1, tile_b) blocks are full in the leading dim and 128-aligned in
    # lanes, so every grid step is a clean disjoint store.
    num_tiles = max(1, pl.cdiv(B, tile_b))
    B_pad = num_tiles * tile_b
    uid = jnp.pad(users.astype(jnp.int32), (0, B_pad - B)).reshape(1, B_pad)
    iid = jnp.pad(items.astype(jnp.int32), (0, B_pad - B)).reshape(1, B_pad)

    # VMEM budget: actual footprint + 50% margin, floored at the 32 MiB scoped
    # default and clamped to physical capacity (minus headroom) — no 2x hedge.
    need = _footprint_bytes(n_users, n_items, F, tile_b)
    vmem_limit = max(need + need // 2, 32 * 1024 * 1024)
    vmem_limit = min(vmem_limit, vmem_cap - 4 * 1024 * 1024)

    out = pl.pallas_call(
        lfm_kernel,
        out_shape=jax.ShapeDtypeStruct((1, B_pad), jnp.float32),
        grid_spec=pltpu.PrefetchScalarGridSpec(
            num_scalar_prefetch=0,
            grid=(num_tiles,),
            in_specs=[
                # lane-dense flat id rows, one (1, tile_b) chunk per grid step
                pl.BlockSpec((1, tile_b), lambda i: (0, i)),
                pl.BlockSpec((1, tile_b), lambda i: (0, i)),
                # full embedding tables, fetched once, single-buffered
                pl.BlockSpec((n_users, F), lambda i: (0, 0),
                             pipeline_mode=pl.Buffered(1)),
                pl.BlockSpec((n_items, F), lambda i: (0, 0),
                             pipeline_mode=pl.Buffered(1)),
            ],
            # lane-dense (1, tile_b) output chunk per grid step
            out_specs=pl.BlockSpec((1, tile_b), lambda i: (0, i)),
        ),
        compiler_params=pltpu.CompilerParams(
            dimension_semantics=("parallel",),
            vmem_limit_bytes=vmem_limit,
        ),
    )(uid, iid, user_emb, item_emb)

    return out.reshape(B_pad)[:B]  # drop padding; matches preds.squeeze(1)


if __name__ == "__main__":
    # Small, deterministic setup consistent with LFM.__init__ shapes.
    n_users, n_items, n_factors = 96, 64, 32
    batch = 1024                    # auto tile -> 2 parallel tiles of 512 rows

    key = jax.random.PRNGKey(0)
    k_u, k_i, k_ru, k_ri = jax.random.split(key, 4)

    # nn.init.normal_(weight, std=0.01)
    user_emb = 0.01 * jax.random.normal(k_u, (n_users, n_factors), dtype=jnp.float32)
    item_emb = 0.01 * jax.random.normal(k_i, (n_items, n_factors), dtype=jnp.float32)

    users = jax.random.randint(k_ru, (batch,), 0, n_users, dtype=jnp.int32)
    items = jax.random.randint(k_ri, (batch,), 0, n_items, dtype=jnp.int32)

    preds = lfm_forward(users, items, user_emb, item_emb)
    preds = jax.block_until_ready(preds)

    # Pure-JAX reference check of the forward semantics.
    ref = jnp.sum(user_emb[users] * item_emb[items], axis=1)
    assert preds.shape == (batch,)
    assert jnp.allclose(preds, ref, atol=1e-6, rtol=1e-5)

    print("KERNEL_OK")
</pallas_src>

<mosaic_0001>
module attributes {stable_mosaic.version = 11 : i64} {
  func.func @lfm_kernel(%arg0: i32, %arg1: memref<1x512xi32, #tpu.memory_space<vmem>>, %arg2: memref<1x512xi32, #tpu.memory_space<vmem>>, %arg3: memref<96x32xf32, #tpu.memory_space<vmem>>, %arg4: memref<64x32xf32, #tpu.memory_space<vmem>>, %arg5: memref<1x512xf32, #tpu.memory_space<vmem>>) attributes {dimension_semantics = [#tpu.dimension_semantics<parallel>], iteration_bounds = array<i64: 2>, scalar_prefetch = 0 : i64, scratch_operands = 0 : i64, tpu.core_type = #tpu.core_type<tc>, window_params = [{transform_indices = @transform_0, window_bounds = array<i64: 1, 512>}, {transform_indices = @transform_1, window_bounds = array<i64: 1, 512>}, {pipeline_mode = #tpu.pipeline_mode<synchronous>, transform_indices = @transform_2, window_bounds = array<i64: 96, 32>}, {pipeline_mode = #tpu.pipeline_mode<synchronous>, transform_indices = @transform_3, window_bounds = array<i64: 64, 32>}, {transform_indices = @transform_4, window_bounds = array<i64: 1, 512>}]} {
    %c0 = arith.constant 0 : index
    %c0_0 = arith.constant 0 : index
    %0 = vector.load %arg1[%c0, %c0_0] : memref<1x512xi32, #tpu.memory_space<vmem>>, vector<1x512xi32>
    %c0_1 = arith.constant 0 : index
    %c0_2 = arith.constant 0 : index
    %1 = vector.load %arg2[%c0_1, %c0_2] : memref<1x512xi32, #tpu.memory_space<vmem>>, vector<1x512xi32>
    %2 = tpu.iota {dimensions = array<i32: 0>} : vector<96x512xi32>
    %3 = vector.broadcast %0 : vector<1x512xi32> to vector<96x512xi32>
    %4 = arith.cmpi eq, %2, %3 : vector<96x512xi32>
    %5 = tpu.iota {dimensions = array<i32: 0>} : vector<64x512xi32>
    %6 = vector.broadcast %1 : vector<1x512xi32> to vector<64x512xi32>
    %7 = arith.cmpi eq, %5, %6 : vector<64x512xi32>
    %8 = arith.extui %4 : vector<96x512xi1> to vector<96x512xi32>
    %9 = arith.sitofp %8 : vector<96x512xi32> to vector<96x512xf32>
    %10 = arith.extui %7 : vector<64x512xi1> to vector<64x512xi32>
    %11 = arith.sitofp %10 : vector<64x512xi32> to vector<64x512xf32>
    %c0_3 = arith.constant 0 : index
    %c0_4 = arith.constant 0 : index
    %12 = vector.load %arg3[%c0_3, %c0_4] : memref<96x32xf32, #tpu.memory_space<vmem>>, vector<96x32xf32>
    %cst = arith.constant dense<0.000000e+00> : vector<32x512xf32>
    %13 = tpu.matmul %12, %9, %cst {dimension_numbers = #tpu.dot_dimension_numbers<[0], [0], [1], [1], [0, 1, 1, 1], [], []>} : vector<96x32xf32>, vector<96x512xf32>, vector<32x512xf32> -> vector<32x512xf32>
    %c0_5 = arith.constant 0 : index
    %c0_6 = arith.constant 0 : index
    %14 = vector.load %arg4[%c0_5, %c0_6] : memref<64x32xf32, #tpu.memory_space<vmem>>, vector<64x32xf32>
    %cst_7 = arith.constant dense<0.000000e+00> : vector<32x512xf32>
    %15 = tpu.matmul %14, %11, %cst_7 {dimension_numbers = #tpu.dot_dimension_numbers<[0], [0], [1], [1], [0, 1, 1, 1], [], []>} : vector<64x32xf32>, vector<64x512xf32>, vector<32x512xf32> -> vector<32x512xf32>
    %16 = arith.mulf %13, %15 : vector<32x512xf32>
    %cst_8 = arith.constant dense<0.000000e+00> : vector<512xf32>
    %17 = vector.multi_reduction <add>, %16, %cst_8 [0] : vector<32x512xf32> to vector<512xf32>
    %18 = vector.shape_cast %17 : vector<512xf32> to vector<1x512xf32>
    %c0_9 = arith.constant 0 : index
    %c0_10 = arith.constant 0 : index
    %19 = vector.load %arg5[%c0_9, %c0_10] : memref<1x512xf32, #tpu.memory_space<vmem>>, vector<1x512xf32>
    tpu.vector_store %arg5[%c0_9, %c0_10], %18 {strides = array<i32>} : memref<1x512xf32, #tpu.memory_space<vmem>>, vector<1x512xf32>,
    return
  }
  func.func @transform_0(%arg0: i32) -> (i32, i32) {
    %c0_i32 = arith.constant 0 : i32
    %c0_i32_0 = arith.constant 0 : i32
    return %c0_i32, %arg0 : i32, i32
  }
  func.func @transform_1(%arg0: i32) -> (i32, i32) {
    %c0_i32 = arith.constant 0 : i32
    %c0_i32_0 = arith.constant 0 : i32
    return %c0_i32, %arg0 : i32, i32
  }
  func.func @transform_2(%arg0: i32) -> (i32, i32) {
    %c0_i32 = arith.constant 0 : i32
    %c0_i32_0 = arith.constant 0 : i32
    %c0_i32_1 = arith.constant 0 : i32
    return %c0_i32, %c0_i32_0 : i32, i32
  }
  func.func @transform_3(%arg0: i32) -> (i32, i32) {
    %c0_i32 = arith.constant 0 : i32
    %c0_i32_0 = arith.constant 0 : i32
    %c0_i32_1 = arith.constant 0 : i32
    return %c0_i32, %c0_i32_0 : i32, i32
  }
  func.func @transform_4(%arg0: i32) -> (i32, i32) {
    %c0_i32 = arith.constant 0 : i32
    %c0_i32_0 = arith.constant 0 : i32
    return %c0_i32, %arg0 : i32, i32
  }
}

</mosaic_0001>

<bundles_post_ra>
// kernel: tpu_custom_call.1
= control target key start
LH: loop header
LB: loop body
LE: loop exit
PB: predicated region body
PF: predicated region fallthrough
CT: control target
= control target key end

     0   :  { %9 = vsyncpa [#allocation3], 0  ;;  %s1746_s0 = inlined_call_operand.vmem [shape: s32[1,1024], index: 0, kind: input, shape index: {}]   ;;  %s1747_s1 = inlined_call_operand.vmem [shape: s32[1,1024], index: 1, kind: input, shape index: {}]   ;;  %s1748_s2 = inlined_call_operand.vmem [shape: f32[96,32], index: 2, kind: input, shape index: {}]   ;;  %s1749_s3 = inlined_call_operand.vmem [shape: f32[64,32], index: 3, kind: input, shape index: {}]   ;;  %s1750_s4 = inlined_call_operand.hbm [shape: f32[1,1024], index: 4, kind: output, shape index: {}]  }
   0x1   :  { %11 = vsyncpa [#allocation3 + $0x1], 0  ;;  %s1306_s15 = smov 0   ;;  %s1308_s16 = smov 0  }
   0x2   :  { %s1310_s17 = smov 0   ;;  %s1312_s18 = smov 0  }
   0x3 LB: > { %s971_s19 = sadd.s32 4294967295, %s1278_s18   ;;  %s972_s20 = sadd.s32 4294967294, %s1278_s18   ;;  %s1278_s18 = sphi %s1312_s18, %s1756_s18   ;;  %s1274_s17 = sphi %s1310_s17, %s1755_s17   ;;  %s1270_s16 = sphi %s1308_s16, %s1754_s16   ;;  %s1266_s15 = sphi %s1306_s15, %s1753_s15  }
   0x4   : > { %s1329_s21 = sadd.s32 1, %s1278_s18   ;;  %s118_s22 = sadd.s32 1, %s1274_s17 }
   0x5   : > { %s115_s23 = ssub.s32 %s1278_s18, %s1329_s21  ;;  %p128_p0 = scmp.ne.s32.totalorder %s1274_s17, %s1270_s16 }
   0x6   : > { %p116_p1 = scmp.eq.s32.totalorder %s115_s23, 0  ;;  %p129_p2 = scmp.eq.s32.totalorder %s971_s19, 1 }
   0x7   : > { %p134_p3 = scmp.ne.s32.totalorder %s1270_s16, %s1266_s15  ;;  %p135_p4 = scmp.eq.s32.totalorder %s972_s20, 1 }
   0x8   : > { %s1341_s24 = scalar_select %p116_p1, %s1274_s17, %s118_s22  }
   0x9   : > { %p1343_p5 = por %p129_p2, %p128_p0  ;;  %p1347_p6 = por %p135_p4, %p134_p3 }
   0xa   : > { %p975_p7 = scmp.ge.s32.totalorder %s1278_s18, 1  ;;  %p175_p8 = scmp.lt.s32.totalorder %s1278_s18, 3 }
   0xc   : > { %p176_p9 = pnand %p975_p7, %p175_p8 }
   0xd   : > { %s1391_s8 = sshll.u32 (!%p176_p9), %s971_s19, 2  ;;  %s1236_s10 = scalar_lea.hbm (!%p176_p9), %s1750_s4, 8 }
   0xe   : > { %179 = sbr.rel (%p176_p9) target bundleno = 397 (0x18d), region = 36  ;;  %p205_p10 = scmp.lt.s32.totalorder (!%p176_p9), %s1391_s8, 7 }
   0xf   : > { %s902_s27 = scalar_lea.hbm (!%p176_p9), %s1750_s4, %s1391_s8 }
  0x10   : > { %s906_s30 = sshll.u32 (!%p176_p9), %s902_s27, 4  ;;  %s907_s30 = int_to_ptr.hbm [resolvable:$true] %s906_s30 }
  0x11   : > { %s1230_s5 = sshra.s32 (!%p176_p9), %s907_s30, 4  ;;  %s1231_s5 = int_to_ptr.hbm [resolvable:$true] %s1230_s5 }
  0x12   : > { %s1232_s6 = scalar_lea.hbm (!%p176_p9), %s1231_s5, 4  ;;  %p1237_p0 = scmp.lt.s32.totalorder (!%p176_p9), %s1231_s5, %s1750_s4 }
  0x13   : > { %v478_v0 = vld [vmem:[%s1748_s2] sm:$0xff]  ;;  %v479_v2 = vld [vmem:[%s1748_s2 + $0x8] sm:$0xff]  ;;  %v480_v4 = vld [vmem:[%s1748_s2 + $0x10] sm:$0xff]  ;;  %s1401_s13 = scalar_select %p205_p10, %s1391_s8, 7  ;;  %v217_v17 = vlaneseq  ;;  %v1280_v28 = vmov 1.0  }
  0x14   : > { %490 = vxpose.xlu0.b32.start [1/12] (short) (narrow) %v478_v0, 32  ;;  %v651_v1 = vld [vmem:[%s1749_s3] sm:$0xff]  ;;  %v652_v3 = vld [vmem:[%s1749_s3 + $0x8] sm:$0xff]  ;;  %v653_v5 = vld [vmem:[%s1749_s3 + $0x10] sm:$0xff]  ;;  %p1233_p11 = scmp.ne.s32.totalorder %s1231_s5, %s1232_s6  ;;  %p1238_p1 = scmp.lt.s32.totalorder %s1236_s10, %s1232_s6 }
  0x15   : > { %659 = vxpose.xlu1.b32.start [1/8] (short) (narrow) %v651_v1, 32  ;;  %v481_v6 = vld [vmem:[%s1748_s2 + $0x18] sm:$0xff]  ;;  %v482_v8 = vld [vmem:[%s1748_s2 + $0x20] sm:$0xff]  ;;  %v483_v10 = vld [vmem:[%s1748_s2 + $0x28] sm:$0xff]  ;;  %s207_s23 = scalar_lea.vmem %s1746_s0, %s1401_s13  ;;  %v1416_v19 = vshrl.u32 %v217_v17, 7  ;;  %s212_s20 = scalar_lea.vmem %s1747_s1, %s1401_s13 }
  0x16   : > { %v654_v7 = vld [vmem:[%s1749_s3 + $0x18] sm:$0xff]  ;;  %v655_v9 = vld [vmem:[%s1749_s3 + $0x20] sm:$0xff]  ;;  %v656_v11 = vld [vmem:[%s1749_s3 + $0x28] sm:$0xff]  ;;  %s201_s13 = sand.u32 1, %s1270_s16   ;;  %p1234_p12 = pnand %p1233_p11, %p1343_p5 }
  0x17   : > { %v484_v12 = vld [vmem:[%s1748_s2 + $0x30] sm:$0xff]  ;;  %v485_v14 = vld [vmem:[%s1748_s2 + $0x38] sm:$0xff]  ;;  %v215_v16 = vld [vmem:[%s207_s23] sm:$0xf]  ;;  %v229_v23 = vadd.s32 88, %v1416_v19  ;;  %v228_v24 = vadd.s32 80, %v1416_v19  ;;  %p1239_p2 = por %p1238_p1, %p1237_p0 }
  0x18   : > { %v657_v13 = vld [vmem:[%s1749_s3 + $0x30] sm:$0xff]  ;;  %v658_v15 = vld [vmem:[%s1749_s3 + $0x38] sm:$0xff]  ;;  %v1413_v18 = vperm.slane %v215_v16, 0  ;;  %v1418_v20 = vperm.slane %v215_v16, 1  ;;  %v1420_v21 = vperm.slane %v215_v16, 2  ;;  %v1422_v22 = vperm.slane %v215_v16, 3  ;;  %p1235_p13 = pneg %p1234_p12 }
  0x19   : > { %v227_v25 = vadd.s32 72, %v1416_v19  ;;  %v486_v26 = vld [vmem:[%s1748_s2 + $0x40] sm:$0xff]  ;;  %v226_v27 = vadd.s32 64, %v1416_v19  ;;  %v1444_v29 = vadd.s32 56, %v1416_v19  ;;  %v1459_v30 = vadd.s32 48, %v1416_v19  ;;  %v487_v31 = vld [vmem:[%s1748_s2 + $0x48] sm:$0xff] }
  0x1a   : > { %vm278_vm0 = vcmp.eq.s32.totalorder %v229_v23, %v1413_v18  ;;  %vm279_vm1 = vcmp.eq.s32.totalorder %v229_v23, %v1418_v20  ;;  %vm280_vm2 = vcmp.eq.s32.totalorder %v229_v23, %v1420_v21  ;;  %vm281_vm3 = vcmp.eq.s32.totalorder %v229_v23, %v1422_v22  ;;  %v488_v36 = vld [vmem:[%s1748_s2 + $0x50] sm:$0xff]  ;;  %v489_v38 = vld [vmem:[%s1748_s2 + $0x58] sm:$0xff]  ;;  %v216_v39 = vld [vmem:[%s212_s20] sm:$0xf]  ;;  %s976_s19 = sshll.u32 %s201_s13, 2  ;;  %s892_s8 = scalar_lea.sflag [#allocation3], %s201_s13 }
  0x1b   : > { %1059 = vmatpush.msk.msra.mxu0 %vm278_vm0, %v1280_v28  ;;  %1075 = vmatpush.msk.msra.mxu1 %vm279_vm1, %v1280_v28  ;;  %vm274_vm4 = vcmp.eq.s32.totalorder %v228_v24, %v1413_v18  ;;  %vm275_vm5 = vcmp.eq.s32.totalorder %v228_v24, %v1418_v20  ;;  %vm276_vm6 = vcmp.eq.s32.totalorder %v228_v24, %v1420_v21  ;;  %v1474_v32 = vadd.s32 40, %v1416_v19  ;;  %s203_s28 = scalar_lea.vmem [#allocation2], %s976_s19  ;;  %p1240_p3 = pnand %p1239_p2, %p1235_p13 }
  0x1c   : > { %491 = vxpose.xlu0.b32.cont [2/12] (short) (narrow) %v479_v2, 32  ;;  %1091 = vmatpush.msk.msra.mxu2 %vm280_vm2, %v1280_v28  ;;  %vm277_vm7 = vcmp.eq.s32.totalorder %v228_v24, %v1422_v22  ;;  %vm270_vm8 = vcmp.eq.s32.totalorder %v227_v25, %v1413_v18  ;;  %vm271_vm9 = vcmp.eq.s32.totalorder %v227_v25, %v1418_v20  ;;  %v1489_v33 = vadd.s32 32, %v1416_v19  ;;  %s904_s29 = sshll.u32 %s203_s28, 4  ;;  %s905_s29 = int_to_ptr.vmem [resolvable:$true] %s904_s29 }
  0x1d   : > { %660 = vxpose.xlu1.b32.cont [2/8] (short) (narrow) %v652_v3, 32  ;;  %1107 = vmatpush.msk.msra.mxu3 %vm281_vm3, %v1280_v28  ;;  %vm272_vm10 = vcmp.eq.s32.totalorder %v227_v25, %v1420_v21  ;;  %vm273_vm11 = vcmp.eq.s32.totalorder %v227_v25, %v1422_v22  ;;  %vm266_vm12 = vcmp.eq.s32.totalorder %v226_v27, %v1413_v18  ;;  %v1503_v34 = vadd.s32 24, %v1416_v19 }
  0x1e   : > { %1060 = vmatpush.msk.msra.mxu0 %vm274_vm4, %v1280_v28  ;;  %1076 = vmatpush.msk.msra.mxu1 %vm275_vm5, %v1280_v28  ;;  %vm267_vm13 = vcmp.eq.s32.totalorder %v226_v27, %v1418_v20  ;;  %vm268_vm14 = vcmp.eq.s32.totalorder %v226_v27, %v1420_v21  ;;  %vm269_vm15 = vcmp.eq.s32.totalorder %v226_v27, %v1422_v22  ;;  %v1518_v35 = vadd.s32 16, %v1416_v19 }
  0x1f   : > { %1092 = vmatpush.msk.msra.mxu2 %vm276_vm6, %v1280_v28  ;;  %1108 = vmatpush.msk.msra.mxu3 %vm277_vm7, %v1280_v28  ;;  %vm262_vm0 = vcmp.eq.s32.totalorder %v1444_v29, %v1413_v18  ;;  %vm263_vm1 = vcmp.eq.s32.totalorder %v1444_v29, %v1418_v20  ;;  %vm264_vm2 = vcmp.eq.s32.totalorder %v1444_v29, %v1420_v21  ;;  %v1534_v37 = vadd.s32 8, %v1416_v19 }
  0x20   : > { %1061 = vmatpush.msk.msra.mxu0 %vm270_vm8, %v1280_v28  ;;  %1077 = vmatpush.msk.msra.mxu1 %vm271_vm9, %v1280_v28  ;;  %vm265_vm3 = vcmp.eq.s32.totalorder %v1444_v29, %v1422_v22  ;;  %vm258_vm4 = vcmp.eq.s32.totalorder %v1459_v30, %v1413_v18  ;;  %vm259_vm5 = vcmp.eq.s32.totalorder %v1459_v30, %v1418_v20  ;;  %v284_v40 = vperm.slane %v216_v39, 2 }
  0x21   : > { %1093 = vmatpush.msk.msra.mxu2 %vm272_vm10, %v1280_v28  ;;  %1109 = vmatpush.msk.msra.mxu3 %vm273_vm11, %v1280_v28  ;;  %vm260_vm6 = vcmp.eq.s32.totalorder %v1459_v30, %v1420_v21  ;;  %vm261_vm7 = vcmp.eq.s32.totalorder %v1459_v30, %v1422_v22  ;;  %vm254_vm8 = vcmp.eq.s32.totalorder %v1474_v32, %v1413_v18  ;;  %v1593_v41 = vperm.slane %v216_v39, 3 }
  0x22   : > { %1062 = vmatpush.msk.msra.mxu0 %vm266_vm12, %v1280_v28  ;;  %1078 = vmatpush.msk.msra.mxu1 %vm267_vm13, %v1280_v28  ;;  %vm255_vm9 = vcmp.eq.s32.totalorder %v1474_v32, %v1418_v20  ;;  %vm256_vm10 = vcmp.eq.s32.totalorder %v1474_v32, %v1420_v21  ;;  %vm257_vm11 = vcmp.eq.s32.totalorder %v1474_v32, %v1422_v22  ;;  %v1595_v42 = vperm.slane %v216_v39, 1 }
  0x23   : > { %1094 = vmatpush.msk.msra.mxu2 %vm268_vm14, %v1280_v28  ;;  %1110 = vmatpush.msk.msra.mxu3 %vm269_vm15, %v1280_v28  ;;  %vm250_vm12 = vcmp.eq.s32.totalorder %v1489_v33, %v1413_v18  ;;  %vm251_vm13 = vcmp.eq.s32.totalorder %v1489_v33, %v1418_v20  ;;  %vm252_vm14 = vcmp.eq.s32.totalorder %v1489_v33, %v1420_v21  ;;  %v282_v43 = vperm.slane %v216_v39, 0 }
  0x24   : > { %492 = vxpose.xlu0.b32.cont [3/12] (short) (narrow) %v480_v4, 32  ;;  %1063 = vmatpush.msk.msra.mxu0 %vm262_vm0, %v1280_v28  ;;  %vm253_vm15 = vcmp.eq.s32.totalorder %v1489_v33, %v1422_v22  ;;  %vm246_vm0 = vcmp.eq.s32.totalorder %v1503_v34, %v1413_v18 }
  0x25   : > { %661 = vxpose.xlu1.b32.cont [3/8] (short) (narrow) %v653_v5, 32  ;;  %1079 = vmatpush.msk.msra.mxu1 %vm263_vm1, %v1280_v28  ;;  %vm247_vm1 = vcmp.eq.s32.totalorder %v1503_v34, %v1418_v20 }
  0x26   : > { %1095 = vmatpush.msk.msra.mxu2 %vm264_vm2, %v1280_v28  ;;  %1111 = vmatpush.msk.msra.mxu3 %vm265_vm3, %v1280_v28  ;;  %vm248_vm2 = vcmp.eq.s32.totalorder %v1503_v34, %v1420_v21  ;;  %vm249_vm3 = vcmp.eq.s32.totalorder %v1503_v34, %v1422_v22 }
  0x27   : > { %1064 = vmatpush.msk.msra.mxu0 %vm258_vm4, %v1280_v28  ;;  %1080 = vmatpush.msk.msra.mxu1 %vm259_vm5, %v1280_v28  ;;  %vm242_vm4 = vcmp.eq.s32.totalorder %v1518_v35, %v1413_v18  ;;  %vm243_vm5 = vcmp.eq.s32.totalorder %v1518_v35, %v1418_v20 }
  0x28   : > { %1096 = vmatpush.msk.msra.mxu2 %vm260_vm6, %v1280_v28  ;;  %1112 = vmatpush.msk.msra.mxu3 %vm261_vm7, %v1280_v28  ;;  %vm244_vm6 = vcmp.eq.s32.totalorder %v1518_v35, %v1420_v21  ;;  %vm245_vm7 = vcmp.eq.s32.totalorder %v1518_v35, %v1422_v22 }
  0x29   : > { %1065 = vmatpush.msk.msra.mxu0 %vm254_vm8, %v1280_v28  ;;  %1081 = vmatpush.msk.msra.mxu1 %vm255_vm9, %v1280_v28  ;;  %vm238_vm8 = vcmp.eq.s32.totalorder %v1534_v37, %v1413_v18  ;;  %vm239_vm9 = vcmp.eq.s32.totalorder %v1534_v37, %v1418_v20 }
  0x2a   : > { %1097 = vmatpush.msk.msra.mxu2 %vm256_vm10, %v1280_v28  ;;  %1113 = vmatpush.msk.msra.mxu3 %vm257_vm11, %v1280_v28  ;;  %vm240_vm10 = vcmp.eq.s32.totalorder %v1534_v37, %v1420_v21  ;;  %vm241_vm11 = vcmp.eq.s32.totalorder %v1534_v37, %v1422_v22 }
  0x2b   : > { %1066 = vmatpush.msk.msra.mxu0 %vm250_vm12, %v1280_v28  ;;  %1082 = vmatpush.msk.msra.mxu1 %vm251_vm13, %v1280_v28  ;;  %vm234_vm12 = vcmp.eq.s32.totalorder %v1416_v19, %v1413_v18  ;;  %vm235_vm13 = vcmp.eq.s32.totalorder %v1416_v19, %v1418_v20 }
  0x2c   : > { %493 = vxpose.xlu0.b32.cont [4/12] (short) (narrow) %v481_v6, 32  ;;  %1098 = vmatpush.msk.msra.mxu2 %vm252_vm14, %v1280_v28  ;;  %vm236_vm14 = vcmp.eq.s32.totalorder %v1416_v19, %v1420_v21 }
  0x2d   : > { %662 = vxpose.xlu1.b32.cont [4/8] (short) (narrow) %v654_v7, 32  ;;  %1114 = vmatpush.msk.msra.mxu3 %vm253_vm15, %v1280_v28  ;;  %vm237_vm15 = vcmp.eq.s32.totalorder %v1416_v19, %v1422_v22 }
  0x2e   : > { %1067 = vmatpush.msk.msra.mxu0 %vm246_vm0, %v1280_v28  ;;  %1083 = vmatpush.msk.msra.mxu1 %vm247_vm1, %v1280_v28  ;;  %vm316_vm0 = vcmp.eq.s32.totalorder %v1444_v29, %v284_v40  ;;  %vm317_vm1 = vcmp.eq.s32.totalorder %v1444_v29, %v1593_v41 }
  0x2f   : > { %1099 = vmatpush.msk.msra.mxu2 %vm248_vm2, %v1280_v28  ;;  %1115 = vmatpush.msk.msra.mxu3 %vm249_vm3, %v1280_v28  ;;  %vm312_vm2 = vcmp.eq.s32.totalorder %v1459_v30, %v284_v40  ;;  %vm313_vm3 = vcmp.eq.s32.totalorder %v1459_v30, %v1593_v41 }
  0x30   : > { %1068 = vmatpush.msk.msra.mxu0 %vm242_vm4, %v1280_v28  ;;  %1084 = vmatpush.msk.msra.mxu1 %vm243_vm5, %v1280_v28  ;;  %vm315_vm4 = vcmp.eq.s32.totalorder %v1444_v29, %v1595_v42  ;;  %vm308_vm5 = vcmp.eq.s32.totalorder %v1474_v32, %v284_v40 }
  0x31   : > { %1100 = vmatpush.msk.msra.mxu2 %vm244_vm6, %v1280_v28  ;;  %1116 = vmatpush.msk.msra.mxu3 %vm245_vm7, %v1280_v28  ;;  %vm309_vm6 = vcmp.eq.s32.totalorder %v1474_v32, %v1593_v41  ;;  %vm311_vm7 = vcmp.eq.s32.totalorder %v1459_v30, %v1595_v42 }
  0x32   : > { %1069 = vmatpush.msk.msra.mxu0 %vm238_vm8, %v1280_v28  ;;  %1085 = vmatpush.msk.msra.mxu1 %vm239_vm9, %v1280_v28  ;;  %vm304_vm8 = vcmp.eq.s32.totalorder %v1489_v33, %v284_v40  ;;  %vm305_vm9 = vcmp.eq.s32.totalorder %v1489_v33, %v1593_v41 }
  0x33   : > { %1101 = vmatpush.msk.msra.mxu2 %vm240_vm10, %v1280_v28  ;;  %1117 = vmatpush.msk.msra.mxu3 %vm241_vm11, %v1280_v28  ;;  %vm307_vm10 = vcmp.eq.s32.totalorder %v1474_v32, %v1595_v42  ;;  %vm314_vm11 = vcmp.eq.s32.totalorder %v1444_v29, %v282_v43 }
  0x34   : > { %494 = vxpose.xlu0.b32.cont [5/12] (short) (narrow) %v482_v8, 32  ;;  %1070 = vmatpush.msk.msra.mxu0 %vm234_vm12, %v1280_v28  ;;  %vm310_vm12 = vcmp.eq.s32.totalorder %v1459_v30, %v282_v43 }
  0x35   : > { %663 = vxpose.xlu1.b32.cont [5/8] (short) (narrow) %v655_v9, 32  ;;  %1086 = vmatpush.msk.msra.mxu1 %vm235_vm13, %v1280_v28  ;;  %vm306_vm13 = vcmp.eq.s32.totalorder %v1474_v32, %v282_v43 }
  0x36   : > { %1102 = vmatpush.msk.msra.mxu2 %vm236_vm14, %v1280_v28  ;;  %1118 = vmatpush.msk.msra.mxu3 %vm237_vm15, %v1280_v28  ;;  %vm300_vm14 = vcmp.eq.s32.totalorder %v1503_v34, %v284_v40  ;;  %vm301_vm15 = vcmp.eq.s32.totalorder %v1503_v34, %v1593_v41 }
  0x37   : > { %1135 = vmatpush.msk.msrb.mxu1 %vm315_vm4, %v1280_v28  ;;  %1123 = vmatpush.msk.msrb.mxu0 %vm314_vm11, %v1280_v28  ;;  %vm299_vm4 = vcmp.eq.s32.totalorder %v1503_v34, %v1595_v42  ;;  %vm289_vm11 = vcmp.eq.s32.totalorder %v1416_v19, %v1593_v41 }
  0x38   : > { %1147 = vmatpush.msk.msrb.mxu2 %vm316_vm0, %v1280_v28  ;;  %1159 = vmatpush.msk.msrb.mxu3 %vm317_vm1, %v1280_v28  ;;  %vm303_vm0 = vcmp.eq.s32.totalorder %v1489_v33, %v1595_v42  ;;  %vm302_vm1 = vcmp.eq.s32.totalorder %v1489_v33, %v282_v43 }
  0x39   : > { %1136 = vmatpush.msk.msrb.mxu1 %vm311_vm7, %v1280_v28  ;;  %1124 = vmatpush.msk.msrb.mxu0 %vm310_vm12, %v1280_v28  ;;  %vm293_vm7 = vcmp.eq.s32.totalorder %v1534_v37, %v1593_v41  ;;  %vm290_vm12 = vcmp.eq.s32.totalorder %v1534_v37, %v282_v43 }
  0x3a   : > { %1148 = vmatpush.msk.msrb.mxu2 %vm312_vm2, %v1280_v28  ;;  %1160 = vmatpush.msk.msrb.mxu3 %vm313_vm3, %v1280_v28  ;;  %vm296_vm2 = vcmp.eq.s32.totalorder %v1518_v35, %v284_v40  ;;  %vm297_vm3 = vcmp.eq.s32.totalorder %v1518_v35, %v1593_v41 }
  0x3b   : > { %1137 = vmatpush.msk.msrb.mxu1 %vm307_vm10, %v1280_v28  ;;  %1125 = vmatpush.msk.msrb.mxu0 %vm306_vm13, %v1280_v28  ;;  %vm288_vm10 = vcmp.eq.s32.totalorder %v1416_v19, %v284_v40  ;;  %vm291_vm13 = vcmp.eq.s32.totalorder %v1534_v37, %v1595_v42 }
  0x3c   : > { %495 = vxpose.xlu0.b32.cont [6/12] (short) (narrow) %v483_v10, 32  ;;  %1149 = vmatpush.msk.msrb.mxu2 %vm308_vm5, %v1280_v28  ;;  %vm298_vm5 = vcmp.eq.s32.totalorder %v1503_v34, %v282_v43 }
  0x3d   : > { %664 = vxpose.xlu1.b32.cont [6/8] (short) (narrow) %v656_v11, 32  ;;  %1161 = vmatpush.msk.msrb.mxu3 %vm309_vm6, %v1280_v28  ;;  %vm292_vm6 = vcmp.eq.s32.totalorder %v1534_v37, %v284_v40 }
  0x3e   : > { %1150 = vmatpush.msk.msrb.mxu2 %vm304_vm8, %v1280_v28  ;;  %1138 = vmatpush.msk.msrb.mxu1 %vm303_vm0, %v1280_v28  ;;  %vm295_vm8 = vcmp.eq.s32.totalorder %v1518_v35, %v1595_v42  ;;  %vm286_vm0 = vcmp.eq.s32.totalorder %v1416_v19, %v282_v43 }
  0x3f   : > { %1162 = vmatpush.msk.msrb.mxu3 %vm305_vm9, %v1280_v28  ;;  %1126 = vmatpush.msk.msrb.mxu0 %vm302_vm1, %v1280_v28  ;;  %vm294_vm9 = vcmp.eq.s32.totalorder %v1518_v35, %v282_v43  ;;  %vm691_vm1 = vcmask 523264  }
  0x40   : > { %1151 = vmatpush.msk.msrb.mxu2 %vm300_vm14, %v1280_v28  ;;  %1139 = vmatpush.msk.msrb.mxu1 %vm299_vm4, %v1280_v28  ;;  %vm287_vm14 = vcmp.eq.s32.totalorder %v1416_v19, %v1595_v42  ;;  %vm883_vm4 = vcmask 1041408  }
  0x41   : > { %1163 = vmatpush.msk.msrb.mxu3 %vm301_vm15, %v1280_v28  ;;  %1127 = vmatpush.msk.msrb.mxu0 %vm298_vm5, %v1280_v28  ;;  %vm522_vm15 = vcmask 785408   ;;  %vm888_vm5 = vcmp.lt.s32.totalorder %v217_v17, 512 }
  0x42   : > { %1152 = vmatpush.msk.msrb.mxu2 %vm296_vm2, %v1280_v28  ;;  %1140 = vmatpush.msk.msrb.mxu1 %vm295_vm8, %v1280_v28  ;;  %vm879_vm2 = vcmask 1040384  }
  0x43   : > { %1164 = vmatpush.msk.msrb.mxu3 %vm297_vm3, %v1280_v28  ;;  %1128 = vmatpush.msk.msrb.mxu0 %vm294_vm9, %v1280_v28  ;;  %vm881_vm3 = vcmask 1042434  }
  0x44   : > { %496 = vxpose.xlu0.b32.cont [7/12] (short) (narrow) %v484_v12, 32  ;;  %1153 = vmatpush.msk.msrb.mxu2 %vm292_vm6, %v1280_v28 }
  0x45   : > { %665 = vxpose.xlu1.b32.cont [7/8] (short) (narrow) %v657_v13, 32  ;;  %1165 = vmatpush.msk.msrb.mxu3 %vm293_vm7, %v1280_v28 }
  0x46   : > { %1154 = vmatpush.msk.msrb.mxu2 %vm288_vm10, %v1280_v28  ;;  %1141 = vmatpush.msk.msrb.mxu1 %vm291_vm13, %v1280_v28 }
  0x47   : > { %1166 = vmatpush.msk.msrb.mxu3 %vm289_vm11, %v1280_v28  ;;  %1129 = vmatpush.msk.msrb.mxu0 %vm290_vm12, %v1280_v28 }
  0x48   : > { %1142 = vmatpush.msk.msrb.mxu1 %vm287_vm14, %v1280_v28 }
  0x49   : > { %1130 = vmatpush.msk.msrb.mxu0 %vm286_vm0, %v1280_v28 }
  0x4c   : > { %497 = vxpose.xlu0.b32.cont [8/12] (short) (narrow) %v485_v14, 32 }
  0x4d   : > { %666 = vxpose.xlu1.b32.end [8/8] (short) (narrow) %v658_v15, 32 }
  0x54   : > { %498 = vxpose.xlu0.b32.cont [9/12] (short) (narrow) %v486_v26, 32 }
  0x5c   : > { %499 = vxpose.xlu0.b32.cont [10/12] (short) (narrow) %v487_v31, 32 }
  0x64   : > { %500 = vxpose.xlu0.b32.cont [11/12] (short) (narrow) %v488_v36, 32 }
  0x6c   : > { %501 = vxpose.xlu0.b32.end [12/12] (short) (narrow) %v489_v38, 32 }
  0xb8   : > { %v506_v44 = vpop.trf.xlu0 }
  0xb9   : > { %1071 = vmatmul.msk.f32.vlgmr.msra.gmra.mxu0 %vm522_vm15, %v506_v44  ;;  %1087 = vmatmul.msk.f32.vlgmr.msra.gmra.mxu1 %vm522_vm15, %v506_v44  ;;  %v675_v48 = vpop.trf.xlu1 }
  0xba   : > { %1103 = vmatmul.msk.f32.vlgmr.msra.gmra.mxu2 %vm522_vm15, %v506_v44  ;;  %1119 = vmatmul.msk.f32.vlgmr.msra.gmra.mxu3 %vm522_vm15, %v506_v44 }
  0xc0   : > { %v507_v45 = vpop.trf.xlu0 }
  0xc1   : > { %1072 = vmatmul.msk.f32.gmra.mxu0 %vm522_vm15, %v507_v45  ;;  %1088 = vmatmul.msk.f32.gmra.mxu1 %vm522_vm15, %v507_v45  ;;  %v676_v49 = vpop.trf.xlu1 }
  0xc2   : > { %1104 = vmatmul.msk.f32.gmra.mxu2 %vm522_vm15, %v507_v45  ;;  %1120 = vmatmul.msk.f32.gmra.mxu3 %vm522_vm15, %v507_v45 }
  0xc8   : > { %v508_v46 = vpop.trf.xlu0 }
  0xc9   : > { %1073 = vmatmul.msk.f32.gmra.mxu0 %vm522_vm15, %v508_v46  ;;  %1089 = vmatmul.msk.f32.gmra.mxu1 %vm522_vm15, %v508_v46  ;;  %v677_v50 = vpop.trf.xlu1 }
  0xca   : > { %1105 = vmatmul.msk.f32.gmra.mxu2 %vm522_vm15, %v508_v46  ;;  %1121 = vmatmul.msk.f32.gmra.mxu3 %vm522_vm15, %v508_v46 }
  0xd0   : > { %v509_v47 = vpop.trf.xlu0 }
  0xd1   : > { %1074 = vmatmul.msk.f32.gmra.mxu0 %vm522_vm15, %v509_v47  ;;  %1090 = vmatmul.msk.f32.gmra.mxu1 %vm522_vm15, %v509_v47  ;;  %v678_v51 = vpop.trf.xlu1 }
  0xd2   : > { %1106 = vmatmul.msk.f32.gmra.mxu2 %vm522_vm15, %v509_v47  ;;  %1122 = vmatmul.msk.f32.gmra.mxu3 %vm522_vm15, %v509_v47 }
  0xd9   : > { %1131 = vmatmul.msk.f32.vlgmr.msrb.gmra.mxu0 %vm691_vm1, %v675_v48  ;;  %1143 = vmatmul.msk.f32.vlgmr.msrb.gmra.mxu1 %vm691_vm1, %v675_v48 }
  0xda   : > { %1155 = vmatmul.msk.f32.vlgmr.msrb.gmra.mxu2 %vm691_vm1, %v675_v48  ;;  %1167 = vmatmul.msk.f32.vlgmr.msrb.gmra.mxu3 %vm691_vm1, %v675_v48 }
  0xe1   : > { %1132 = vmatmul.msk.f32.gmra.mxu0 %vm691_vm1, %v676_v49  ;;  %1144 = vmatmul.msk.f32.gmra.mxu1 %vm691_vm1, %v676_v49 }
  0xe2   : > { %1156 = vmatmul.msk.f32.gmra.mxu2 %vm691_vm1, %v676_v49  ;;  %1168 = vmatmul.msk.f32.gmra.mxu3 %vm691_vm1, %v676_v49 }
  0xe9   : > { %1133 = vmatmul.msk.f32.gmra.mxu0 %vm691_vm1, %v677_v50  ;;  %1145 = vmatmul.msk.f32.gmra.mxu1 %vm691_vm1, %v677_v50 }
  0xea   : > { %1157 = vmatmul.msk.f32.gmra.mxu2 %vm691_vm1, %v677_v50  ;;  %1169 = vmatmul.msk.f32.gmra.mxu3 %vm691_vm1, %v677_v50 }
  0xf1   : > { %1134 = vmatmul.msk.f32.gmra.mxu0 %vm691_vm1, %v678_v51  ;;  %1146 = vmatmul.msk.f32.gmra.mxu1 %vm691_vm1, %v678_v51 }
  0xf2   : > { %1158 = vmatmul.msk.f32.gmra.mxu2 %vm691_vm1, %v678_v51  ;;  %1170 = vmatmul.msk.f32.gmra.mxu3 %vm691_vm1, %v678_v51 }
 0x136   : > { %v552_v52 = vpop.f32.mrf.mxu0  ;;  %v581_v53 = vpop.f32.mrf.mxu1 }
 0x13d   : > { %v610_v54 = vpop.f32.mrf.mxu2  ;;  %v639_v55 = vpop.f32.mrf.mxu3 }
 0x13e   : > { %v555_v56 = vpop.f32.mrf.mxu0  ;;  %v584_v57 = vpop.f32.mrf.mxu1 }
 0x145   : > { %v613_v58 = vpop.f32.mrf.mxu2  ;;  %v642_v59 = vpop.f32.mrf.mxu3 }
 0x146   : > { %v558_v60 = vpop.f32.mrf.mxu0  ;;  %v587_v61 = vpop.f32.mrf.mxu1 }
 0x14d   : > { %v616_v62 = vpop.f32.mrf.mxu2  ;;  %v645_v63 = vpop.f32.mrf.mxu3 }
 0x14e   : > { %v561_v0 = vpop.f32.mrf.mxu0  ;;  %v590_v1 = vpop.f32.mrf.mxu1 }
 0x155   : > { %v619_v2 = vpop.f32.mrf.mxu2  ;;  %v648_v3 = vpop.f32.mrf.mxu3 }
 0x156   : > { %v721_v4 = vpop.f32.mrf.mxu0  ;;  %v750_v5 = vpop.f32.mrf.mxu1 }
 0x157   : > { %v820_v16 = vmul.f32 %v721_v4, %v552_v52  ;;  %v821_v18 = vmul.f32 %v750_v5, %v581_v53 }
 0x15d   : > { %v779_v6 = vpop.f32.mrf.mxu2  ;;  %v808_v7 = vpop.f32.mrf.mxu3 }
 0x15e   : > { %v724_v8 = vpop.f32.mrf.mxu0  ;;  %v753_v9 = vpop.f32.mrf.mxu1  ;;  %v822_v33 = vmul.f32 %v779_v6, %v610_v54  ;;  %v823_v37 = vmul.f32 %v808_v7, %v639_v55 }
 0x15f   : > { %v824_v14 = vmul.f32 %v724_v8, %v555_v56  ;;  %v825_v15 = vmul.f32 %v753_v9, %v584_v57 }
 0x161   : > { %v836_v21 = vadd.f32 %v824_v14, %v820_v16  ;;  %v845_v22 = vadd.f32 %v825_v15, %v821_v18 }
 0x165   : > { %v782_v10 = vpop.f32.mrf.mxu2  ;;  %v811_v11 = vpop.f32.mrf.mxu3 }
 0x166   : > { %v727_v12 = vpop.f32.mrf.mxu0  ;;  %v756_v13 = vpop.f32.mrf.mxu1  ;;  %v826_v25 = vmul.f32 %v782_v10, %v613_v58  ;;  %v827_v32 = vmul.f32 %v811_v11, %v642_v59 }
 0x167   : > { %v828_v19 = vmul.f32 %v727_v12, %v558_v60  ;;  %v829_v20 = vmul.f32 %v756_v13, %v587_v61 }
 0x168   : > { %v854_v39 = vadd.f32 %v826_v25, %v822_v33  ;;  %v863_v42 = vadd.f32 %v827_v32, %v823_v37 }
 0x169   : > { %v837_v28 = vadd.f32 %v836_v21, %v828_v19  ;;  %v846_v29 = vadd.f32 %v845_v22, %v829_v20 }
 0x16d   : > { %v785_v23 = vpop.f32.mrf.mxu2  ;;  %v814_v24 = vpop.f32.mrf.mxu3 }
 0x16e   : > { %v730_v26 = vpop.f32.mrf.mxu0  ;;  %v759_v27 = vpop.f32.mrf.mxu1  ;;  %v830_v34 = vmul.f32 %v785_v23, %v616_v62  ;;  %v831_v38 = vmul.f32 %v814_v24, %v645_v63 }
 0x16f   : > { %v832_v30 = vmul.f32 %v730_v26, %v561_v0  ;;  %v833_v31 = vmul.f32 %v759_v27, %v590_v1 }
 0x170   : > { %v855_v43 = vadd.f32 %v854_v39, %v830_v34  ;;  %v864_v47 = vadd.f32 %v863_v42, %v831_v38 }
 0x171   : > { %v838_v35 = vadd.f32 %v837_v28, %v832_v30  ;;  %v847_v36 = vadd.f32 %v846_v29, %v833_v31 }
 0x173   : > { %v839_v40 = vrot.slane %v838_v35, 4  ;;  %v848_v41 = vrot.slane %v847_v36, 4 }
 0x175   : > { %v849_v44 = vadd.f32 %v848_v41, %v847_v36  ;;  %v788_v45 = vpop.f32.mrf.mxu2  ;;  %v817_v46 = vpop.f32.mrf.mxu3  ;;  %v840_v48 = vadd.f32 %v839_v40, %v838_v35 }
 0x176   : > { %v834_v49 = vmul.f32 %v788_v45, %v619_v2  ;;  %v835_v50 = vmul.f32 %v817_v46, %v648_v3 }
 0x177   : > { %v850_v51 = vrot.slane %v849_v44, 2  ;;  %v841_v55 = vrot.slane %v840_v48, 2 }
 0x178   : > { %v856_v52 = vadd.f32 %v855_v43, %v834_v49  ;;  %v865_v53 = vadd.f32 %v864_v47, %v835_v50 }
 0x179   : > { %v851_v54 = vadd.f32 %v850_v51, %v849_v44  ;;  %v842_v61 = vadd.f32 %v841_v55, %v840_v48 }
 0x17a   : > { %v857_v56 = vrot.slane %v856_v52, 4  ;;  %v866_v57 = vrot.slane %v865_v53, 4 }
 0x17b   : > { %v852_v58 = vrot.slane %v851_v54, 1  ;;  %v843_v3 = vrot.slane %v842_v61, 1 }
 0x17c   : > { %v858_v59 = vadd.f32 %v857_v56, %v856_v52  ;;  %v867_v60 = vadd.f32 %v866_v57, %v865_v53 }
 0x17d   : > { %v853_v0 = vadd.f32 %v852_v58, %v851_v54  ;;  %v844_v9 = vadd.f32 %v843_v3, %v842_v61 }
 0x17e   : > { %v859_v62 = vrot.slane %v858_v59, 2  ;;  %v868_v63 = vrot.slane %v867_v60, 2 }
 0x17f   : > { %v876_v6 = vrot.slane %v853_v0, 7 }
 0x180   : > { %v860_v1 = vadd.f32 %v859_v62, %v858_v59  ;;  %v869_v2 = vadd.f32 %v868_v63, %v867_v60 }
 0x181   : > { %v880_v12 = vsel %vm879_vm2, %v844_v9, %v876_v6 }
 0x182   : > { %v861_v4 = vrot.slane %v860_v1, 1  ;;  %v870_v5 = vrot.slane %v869_v2, 1 }
 0x184   : > { %v862_v7 = vadd.f32 %v861_v4, %v860_v1  ;;  %v871_v8 = vadd.f32 %v870_v5, %v869_v2 }
 0x186   : > { %v877_v10 = vrot.slane %v862_v7, 6  ;;  %v878_v11 = vrot.slane %v871_v8, 5 }
 0x188   : > { %v882_v13 = vsel %vm881_vm3, %v877_v10, %v878_v11 }
 0x189   : > { %v884_v14 = vsel %vm883_vm4, %v880_v12, %v882_v13 }
 0x18a   : > { %890 = vst.msk [vmem:[%s203_s28] sm:$0xf] %vm888_vm5, %v884_v14 }
 0x18b   : > { %1243 = shalt.err (!%p1240_p3)
}
 0x18c   : > { %1175 = dma.vmem_to_hbm [thread:$0]  (%p1343_p5), %s905_s29, 64, %s907_s30, %s892_s8  }
 0x18d PF: > { %p1181_p4 = scmp.ge.s32.totalorder %s1278_s18, 2  ;;  %s918_s14 = sand.u32 1, %s1266_s15  }
 0x18e   : > { %s919_s20 = scalar_lea.sflag [#allocation3], %s918_s14 }
 0x18f   : > { %p1178_p7 = pnand %p1181_p4, %p1347_p6 }
 0x191   : > { %p1179_p8 = pneg %p1178_p7 }
 0x193   : > { %1261 = dma.done.wait (%p1179_p8), %s919_s20, 64  }
 0x194   : > { %1263 = vsyncadd (%p1179_p8), %s919_s20, 4294967232  ;;  %p14_p9 = scmp.ge.s32.totalorder %s1329_s21, 4   ;;  %s1753_s15 = smov %s1270_s16 }
 0x195   : > { %s1754_s16 = smov %s1274_s17  ;;  %s1755_s17 = smov %s1341_s24 }
 0x196   : > { %s1756_s18 = smov %s1329_s21  ;;  %16 = sbr.rel (!%p14_p9) target bundleno = 3 (0x3), region = 74 }
 0x19b   :  { %925 = vsyncpa [#allocation3], 1 }
 0x19c   :  { %927 = vsyncpa [#allocation3 + $0x1], 1 }

</bundles_post_ra>
